<compile_context>
chip_gen: v5e
topology: v5e:2x2
jax: 0.10.0
libtpu: 0.0.40
codegen_flags: <defaults>
</compile_context>

<pallas_src>
import numpy as np
import jax
import jax.numpy as jnp
from jax.experimental import pallas as pl
from jax.experimental.pallas import tpu as pltpu

NEG_SLOPE = 0.2     # LeakyReLU negative_slope from the module default
PAD_BIAS = -1e4     # added to z at padded edge slots: exp(...) underflows to 0
                    # without producing inf/NaN (safe even for all-padded rows)


def _round_up(x, m):
    return (x + m - 1) // m * m


def mygat_kernel(e_embed_ref, w_ref, feat_src_ref, bias_ref, rst_ref, a_ref):
    """One tile of TN dst nodes; each node owns a full (padded) edge segment.

    e_embed_ref : [TN, DEG, FP] bf16   edge-type embeddings (dst-blocked)
    w_ref       : [FP, FP]      bf16   weight_for_agg (zero-padded)
    feat_src_ref: [TN, DEG, FP] bf16   feat[src[e]] (dst-blocked)
    bias_ref    : [TN, DEG, 1]  f32    0 for real edges, PAD_BIAS for padding
    rst_ref     : [TN, FP]      f32    aggregated node output
    a_ref       : [TN, DEG, FP] f32    attention coefficients
    """
    tn, deg, fp = e_embed_ref.shape

    # Projection on the MXU: bf16 inputs, f32 accumulation.
    z = jnp.dot(e_embed_ref[...].reshape(tn * deg, fp), w_ref[...],
                preferred_element_type=jnp.float32).reshape(tn, deg, fp)

    # Fused LeakyReLU (single vmax) + padded-slot bias.
    z = jnp.maximum(z, NEG_SLOPE * z) + bias_ref[...]

    # Per-dst (segment) softmax over the degree axis, independently per channel.
    m = jnp.max(z, axis=1, keepdims=True)                    # [TN, 1, FP]
    p = jnp.exp(z - m)                                       # [TN, DEG, FP]
    denom = jnp.sum(p, axis=1, keepdims=True)                # [TN, 1, FP]
    a = p * pl.reciprocal(denom, approx=True)                # EUP reciprocal
    a_ref[...] = a

    # Message passing: rst[v] = sum over incoming edges of feat[src] * a.
    rst_ref[...] = jnp.sum(a * feat_src_ref[...].astype(jnp.float32), axis=1)


def mygat_forward(feat, e_feat, src, dst, edge_emb_table, weight_for_agg,
                  *, node_tile=8):
    """feat: [N,F] f32; e_feat/src/dst: [E] int32; edge_emb_table: [T,F];
    weight_for_agg: [F,F].  Returns (rst [N,F] f32, a [E,F] f32)."""
    N, F = feat.shape
    E = int(e_feat.shape[0])
    FP = _round_up(F, 128)             # lane-pad feature dim
    TN = node_tile                     # dst nodes per grid step
    NP = _round_up(N, TN)              # node-pad to a whole number of tiles

    # ---- glue: dst-sorted, degree-blocked edge layout (host index math) ----
    dst_np = np.asarray(dst)
    perm_np = np.argsort(dst_np, kind="stable")
    dst_s_np = dst_np[perm_np].astype(np.int32)
    first_np = np.searchsorted(dst_s_np, dst_s_np, side="left")
    slot_np = (np.arange(E) - first_np).astype(np.int32)      # position within
    max_deg = int(slot_np.max()) + 1 if E > 0 else 1          # its dst segment
    DEG = max(8, _round_up(max_deg, 8))                       # sublane-align

    perm = jnp.asarray(perm_np.astype(np.int32))
    dst_s = jnp.asarray(dst_s_np)
    slot = jnp.asarray(slot_np)

    # ---- glue: embedding lookup, src-feature gather, padding, bf16 casts ----
    # TODO(synk): for graphs too large to pre-gather, move these gathers into
    # the kernel with scalar-prefetched indices (PrefetchScalarGridSpec).
    e_embed = edge_emb_table[e_feat[perm]]                    # [E, F]
    feat_src = feat[src[perm]]                                # [E, F]

    def pad_f(x):
        return jnp.pad(x, ((0, 0), (0, FP - F)))

    e_embed_blk = jnp.zeros((NP, DEG, FP), jnp.bfloat16).at[dst_s, slot].set(
        pad_f(e_embed).astype(jnp.bfloat16))
    feat_src_blk = jnp.zeros((NP, DEG, FP), jnp.bfloat16).at[dst_s, slot].set(
        pad_f(feat_src).astype(jnp.bfloat16))
    bias_blk = jnp.full((NP, DEG, 1), PAD_BIAS, jnp.float32).at[
        dst_s, slot, 0].set(0.0)
    w_pad = jnp.zeros((FP, FP), jnp.bfloat16).at[:F, :F].set(
        weight_for_agg.astype(jnp.bfloat16))

    # ---- kernel launch: 1-D grid over dst-node tiles ----
    grid = (NP // TN,)
    edge_spec = pl.BlockSpec((TN, DEG, FP), lambda i: (i, 0, 0))
    bias_spec = pl.BlockSpec((TN, DEG, 1), lambda i: (i, 0, 0))
    w_spec = pl.BlockSpec((FP, FP), lambda i: (0, 0))
    rst_spec = pl.BlockSpec((TN, FP), lambda i: (i, 0))

    cost = pl.CostEstimate(
        flops=2 * NP * DEG * FP * FP + 8 * NP * DEG * FP,
        transcendentals=NP * DEG * FP + NP * FP,
        bytes_accessed=(2 * 2 * NP * DEG * FP      # bf16 edge inputs
                        + 2 * FP * FP              # bf16 weight
                        + 4 * NP * DEG             # f32 bias
                        + 4 * NP * FP              # f32 rst
                        + 4 * NP * DEG * FP))      # f32 attention out

    rst_pad, a_blk = pl.pallas_call(
        mygat_kernel,
        out_shape=(jax.ShapeDtypeStruct((NP, FP), jnp.float32),
                   jax.ShapeDtypeStruct((NP, DEG, FP), jnp.float32)),
        grid=grid,
        in_specs=[edge_spec, w_spec, edge_spec, bias_spec],
        out_specs=(rst_spec, edge_spec),
        compiler_params=pltpu.CompilerParams(
            dimension_semantics=("parallel",)),
        cost_estimate=cost,
    )(e_embed_blk, w_pad, feat_src_blk, bias_blk)

    # ---- glue: un-pad / un-block back to [N, F] and original edge order ----
    rst = rst_pad[:N, :F]
    a_sorted = a_blk[dst_s, slot][:, :F]                      # dst-sorted order
    a = jnp.zeros((E, F), jnp.float32).at[perm].set(a_sorted)
    return rst, a


def mygat_reference(feat, e_feat, src, dst, edge_emb_table, weight_for_agg):
    """Pure-JAX f32 reference (segment ops) mirroring the PyTorch/DGL forward."""
    N = feat.shape[0]
    z = edge_emb_table[e_feat] @ weight_for_agg
    z = jnp.where(z >= 0.0, z, NEG_SLOPE * z)
    m = jax.ops.segment_max(z, dst, num_segments=N)
    p = jnp.exp(z - m[dst])
    denom = jax.ops.segment_sum(p, dst, num_segments=N)
    a = p / denom[dst]
    rst = jax.ops.segment_sum(a * feat[src], dst, num_segments=N)
    return rst, a


if __name__ == "__main__":
    # Small deterministic problem: N nodes, each with in-degree 3 (no
    # zero-in-degree nodes, matching the module's requirement).
    N = 16            # number of nodes
    F = 64            # in_feats == edge_feats (so u_mul_e broadcasts cleanly)
    NUM_ETYPES = 5
    IN_DEG = 3
    E = N * IN_DEG    # 48 edges

    dst_np = np.repeat(np.arange(N, dtype=np.int32), IN_DEG)
    src_np = np.stack([np.arange(N), (np.arange(N) + 1) % N,
                       (np.arange(N) + 5) % N], axis=1).astype(np.int32).reshape(-1)
    e_feat_np = (np.arange(E) % NUM_ETYPES).astype(np.int32)

    key = jax.random.PRNGKey(0)
    k_emb, k_w, k_feat = jax.random.split(key, 3)
    # nn.Embedding default init: N(0, 1)
    edge_emb_table = jax.random.normal(k_emb, (NUM_ETYPES, F), dtype=jnp.float32)
    # xavier_normal_(weight_for_agg, gain=sqrt(2)): std = sqrt(2)*sqrt(2/(F+F))
    weight_for_agg = jax.random.normal(k_w, (F, F), dtype=jnp.float32) * np.sqrt(2.0 / F)
    feat = jax.random.normal(k_feat, (N, F), dtype=jnp.float32)

    src = jnp.asarray(src_np)
    dst = jnp.asarray(dst_np)
    e_feat = jnp.asarray(e_feat_np)

    # TODO(synk): fc/fc2/res_fc, bias_param and activation belong to the
    # residual/bias/activation branches which are disabled by the module
    # defaults (residual=False, bias=False, activation=None), so they are not
    # part of this forward pass; dropout layers are identity (p=0.0).

    rst, a = jax.block_until_ready(
        mygat_forward(feat, e_feat, src, dst, edge_emb_table, weight_for_agg))

    rst_ref, a_ref = mygat_reference(feat, e_feat, src, dst,
                                     edge_emb_table, weight_for_agg)
    # Tolerances widened slightly vs. the all-f32 v1 because the projection
    # matmul / gathered features now use bf16 operands (f32 accumulation), as
    # requested by the performance review.
    np.testing.assert_allclose(np.asarray(rst), np.asarray(rst_ref),
                               rtol=2e-2, atol=2e-2)
    np.testing.assert_allclose(np.asarray(a), np.asarray(a_ref),
                               rtol=2e-2, atol=2e-2)
    print("KERNEL_OK")
</pallas_src>

<mosaic_0001>
module attributes {stable_mosaic.version = 11 : i64} {
  func.func @mygat_kernel(%arg0: i32, %arg1: memref<8x8x128xbf16, #tpu.memory_space<vmem>>, %arg2: memref<128x128xbf16, #tpu.memory_space<vmem>>, %arg3: memref<8x8x128xbf16, #tpu.memory_space<vmem>>, %arg4: memref<8x8x1xf32, #tpu.memory_space<vmem>>, %arg5: memref<8x128xf32, #tpu.memory_space<vmem>>, %arg6: memref<8x8x128xf32, #tpu.memory_space<vmem>>) attributes {dimension_semantics = [#tpu.dimension_semantics<parallel>], iteration_bounds = array<i64: 2>, scalar_prefetch = 0 : i64, scratch_operands = 0 : i64, tpu.core_type = #tpu.core_type<tc>, window_params = [{transform_indices = @transform_0, window_bounds = array<i64: 8, 8, 128>}, {pipeline_mode = #tpu.pipeline_mode<synchronous>, transform_indices = @transform_1, window_bounds = array<i64: 128, 128>}, {transform_indices = @transform_2, window_bounds = array<i64: 8, 8, 128>}, {transform_indices = @transform_3, window_bounds = array<i64: 8, 8, 1>}, {transform_indices = @transform_4, window_bounds = array<i64: 8, 128>}, {transform_indices = @transform_5, window_bounds = array<i64: 8, 8, 128>}]} {
    %c0 = arith.constant 0 : index
    %c0_0 = arith.constant 0 : index
    %c0_1 = arith.constant 0 : index
    %0 = vector.load %arg1[%c0, %c0_0, %c0_1] : memref<8x8x128xbf16, #tpu.memory_space<vmem>>, vector<8x8x128xbf16>
    %1 = vector.shape_cast %0 : vector<8x8x128xbf16> to vector<64x128xbf16>
    %c0_2 = arith.constant 0 : index
    %c0_3 = arith.constant 0 : index
    %2 = vector.load %arg2[%c0_2, %c0_3] : memref<128x128xbf16, #tpu.memory_space<vmem>>, vector<128x128xbf16>
    %cst = arith.constant dense<0.000000e+00> : vector<64x128xf32>
    %3 = tpu.matmul %1, %2, %cst {dimension_numbers = #tpu.dot_dimension_numbers<[1], [0], [0], [1], [0, 0, 1, 1], [], []>} : vector<64x128xbf16>, vector<128x128xbf16>, vector<64x128xf32> -> vector<64x128xf32>
    %4 = vector.shape_cast %3 : vector<64x128xf32> to vector<8x8x128xf32>
    %cst_4 = arith.constant 2.000000e-01 : f32
    %5 = vector.broadcast %cst_4 : f32 to vector<8x8x128xf32>
    %6 = arith.mulf %5, %4 : vector<8x8x128xf32>
    %7 = arith.maximumf %4, %6 : vector<8x8x128xf32>
    %c0_5 = arith.constant 0 : index
    %c0_6 = arith.constant 0 : index
    %c0_7 = arith.constant 0 : index
    %8 = vector.load %arg4[%c0_5, %c0_6, %c0_7] : memref<8x8x1xf32, #tpu.memory_space<vmem>>, vector<8x8x1xf32>
    %9 = vector.broadcast %8 : vector<8x8x1xf32> to vector<8x8x128xf32>
    %10 = arith.addf %7, %9 : vector<8x8x128xf32>
    %cst_8 = arith.constant dense<0xFF800000> : vector<8x128xf32>
    %11 = vector.multi_reduction <maximumf>, %10, %cst_8 [1] : vector<8x8x128xf32> to vector<8x128xf32>
    %12 = vector.shape_cast %11 : vector<8x128xf32> to vector<8x1x128xf32>
    %13 = vector.broadcast %12 : vector<8x1x128xf32> to vector<8x8x128xf32>
    %14 = arith.subf %10, %13 : vector<8x8x128xf32>
    %15 = math.exp %14 : vector<8x8x128xf32>
    %cst_9 = arith.constant dense<0.000000e+00> : vector<8x128xf32>
    %16 = vector.multi_reduction <add>, %15, %cst_9 [1] : vector<8x8x128xf32> to vector<8x128xf32>
    %17 = vector.shape_cast %16 : vector<8x128xf32> to vector<8x1x128xf32>
    %18 = tpu.reciprocal %17 {approx = true} : vector<8x1x128xf32> -> vector<8x1x128xf32>
    %19 = vector.broadcast %18 : vector<8x1x128xf32> to vector<8x8x128xf32>
    %20 = arith.mulf %15, %19 : vector<8x8x128xf32>
    %c0_10 = arith.constant 0 : index
    %c0_11 = arith.constant 0 : index
    %c0_12 = arith.constant 0 : index
    %21 = vector.load %arg6[%c0_10, %c0_11, %c0_12] : memref<8x8x128xf32, #tpu.memory_space<vmem>>, vector<8x8x128xf32>
    tpu.vector_store %arg6[%c0_10, %c0_11, %c0_12], %20 {strides = array<i32>} : memref<8x8x128xf32, #tpu.memory_space<vmem>>, vector<8x8x128xf32>,
    %c0_13 = arith.constant 0 : index
    %c0_14 = arith.constant 0 : index
    %c0_15 = arith.constant 0 : index
    %22 = vector.load %arg3[%c0_13, %c0_14, %c0_15] : memref<8x8x128xbf16, #tpu.memory_space<vmem>>, vector<8x8x128xbf16>
    %23 = arith.extf %22 : vector<8x8x128xbf16> to vector<8x8x128xf32>
    %24 = arith.mulf %20, %23 : vector<8x8x128xf32>
    %cst_16 = arith.constant dense<0.000000e+00> : vector<8x128xf32>
    %25 = vector.multi_reduction <add>, %24, %cst_16 [1] : vector<8x8x128xf32> to vector<8x128xf32>
    %c0_17 = arith.constant 0 : index
    %c0_18 = arith.constant 0 : index
    %26 = vector.load %arg5[%c0_17, %c0_18] : memref<8x128xf32, #tpu.memory_space<vmem>>, vector<8x128xf32>
    tpu.vector_store %arg5[%c0_17, %c0_18], %25 {strides = array<i32>} : memref<8x128xf32, #tpu.memory_space<vmem>>, vector<8x128xf32>,
    return
  }
  func.func @transform_0(%arg0: i32) -> (i32, i32, i32) {
    %c0_i32 = arith.constant 0 : i32
    %c0_i32_0 = arith.constant 0 : i32
    %c0_i32_1 = arith.constant 0 : i32
    return %arg0, %c0_i32, %c0_i32_0 : i32, i32, i32
  }
  func.func @transform_1(%arg0: i32) -> (i32, i32) {
    %c0_i32 = arith.constant 0 : i32
    %c0_i32_0 = arith.constant 0 : i32
    %c0_i32_1 = arith.constant 0 : i32
    return %c0_i32, %c0_i32_0 : i32, i32
  }
  func.func @transform_2(%arg0: i32) -> (i32, i32, i32) {
    %c0_i32 = arith.constant 0 : i32
    %c0_i32_0 = arith.constant 0 : i32
    %c0_i32_1 = arith.constant 0 : i32
    return %arg0, %c0_i32, %c0_i32_0 : i32, i32, i32
  }
  func.func @transform_3(%arg0: i32) -> (i32, i32, i32) {
    %c0_i32 = arith.constant 0 : i32
    %c0_i32_0 = arith.constant 0 : i32
    %c0_i32_1 = arith.constant 0 : i32
    return %arg0, %c0_i32, %c0_i32_0 : i32, i32, i32
  }
  func.func @transform_4(%arg0: i32) -> (i32, i32) {
    %c0_i32 = arith.constant 0 : i32
    %c0_i32_0 = arith.constant 0 : i32
    return %arg0, %c0_i32 : i32, i32
  }
  func.func @transform_5(%arg0: i32) -> (i32, i32, i32) {
    %c0_i32 = arith.constant 0 : i32
    %c0_i32_0 = arith.constant 0 : i32
    %c0_i32_1 = arith.constant 0 : i32
    return %arg0, %c0_i32, %c0_i32_0 : i32, i32, i32
  }
}

</mosaic_0001>

<bundles_post_ra>
// kernel: tpu_custom_call.1
= control target key start
LH: loop header
LB: loop body
LE: loop exit
PB: predicated region body
PF: predicated region fallthrough
CT: control target
= control target key end

     0   :  { %11 = vsyncpa [#allocation3], 0  ;;  %s1566_s0 = inlined_call_operand.vmem [shape: bf16[16,8,128], index: 0, kind: input, shape index: {}]   ;;  %s1567_s1 = inlined_call_operand.vmem [shape: bf16[128,128], index: 1, kind: input, shape index: {}]   ;;  %s1568_s2 = inlined_call_operand.hbm [shape: bf16[16,8,128], index: 2, kind: input, shape index: {}]   ;;  %s1569_s3 = inlined_call_operand.vmem [shape: f32[16,8,1], index: 3, kind: input, shape index: {}]   ;;  %s1570_s4 = inlined_call_operand.hbm [shape: f32[16,128], index: 4, kind: output, shape index: {0}]   ;;  %s1571_s5 = inlined_call_operand.hbm [shape: f32[16,8,128], index: 5, kind: output, shape index: {1}]  }
   0x1   :  { %13 = vsyncpa [#allocation3 + $0x1], 0 }
   0x2   :  { %14 = vsyncpa [#allocation4], 0 }
   0x3   :  { %16 = vsyncpa [#allocation4 + $0x1], 0 }
   0x4   :  { %17 = vsyncpa [#allocation7], 0 }
   0x5   :  { %19 = vsyncpa [#allocation7 + $0x1], 0  ;;  %s1286_s18 = smov 0   ;;  %s1288_s19 = smov 0  }
   0x6   :  { %s1290_s20 = smov 0   ;;  %s1292_s21 = smov 0  }
   0x7 LB: > { %s1307_s22 = sadd.s32 4294967295, %s1249_s21   ;;  %s904_s23 = sadd.s32 4294967294, %s1249_s21   ;;  %s1249_s21 = sphi %s1292_s21, %s1581_s21   ;;  %s1245_s20 = sphi %s1290_s20, %s1580_s20   ;;  %s1241_s19 = sphi %s1288_s19, %s1579_s19   ;;  %s1237_s18 = sphi %s1286_s18, %s1578_s18  }
   0x8   : > { %s1311_s24 = sadd.s32 1, %s1249_s21   ;;  %s79_s25 = sadd.s32 1, %s1245_s20 }
   0x9   : > { %s76_s26 = ssub.s32 %s1249_s21, %s1311_s24  ;;  %p86_p0 = scmp.ne.s32.totalorder %s1245_s20, %s1241_s19 }
   0xa   : > { %p77_p1 = scmp.eq.s32.totalorder %s76_s26, 0  ;;  %p87_p2 = scmp.eq.s32.totalorder %s1249_s21, 0 }
   0xb   : > { %p92_p3 = scmp.ne.s32.totalorder %s1241_s19, %s1237_s18  ;;  %p93_p4 = scmp.eq.s32.totalorder %s1307_s22, 0 }
   0xc   : > { %s1323_s27 = scalar_select %p77_p1, %s1245_s20, %s79_s25  }
   0xd   : > { %p1325_p5 = por %p87_p2, %p86_p0  ;;  %p1329_p6 = por %p93_p4, %p92_p3 }
   0xe   : > { %p142_p7 = scmp.eq.s32.totalorder %s1307_s22, 1  ;;  %p148_p8 = scmp.eq.s32.totalorder %s904_s23, 1 }
   0xf   : > { %p1047_p10 = scmp.lt.s32.totalorder %s1249_s21, 2  ;;  %s206_s7 = sand.u32 1, %s1245_s20  }
  0x10   : > { %p1336_p11 = por %p142_p7, %p86_p0  ;;  %p1340_p12 = por %p148_p8, %p92_p3 }
  0x11   : > { %s973_s8 = sshll.u32 %s1249_s21, 5  ;;  %s907_s9 = sshll.u32 %s206_s7, 5 }
  0x12   : > { %s215_s12 = scalar_lea.hbm %s1568_s2, %s973_s8  ;;  %s210_s14 = scalar_lea.vmem [#allocation2], %s907_s9 }
  0x13   : > { %s216_s13 = sshll.u32 %s215_s12, 4  ;;  %s218_s15 = sshll.u32 %s210_s14, 4  ;;  %s217_s13 = int_to_ptr.hbm [resolvable:$true] %s216_s13  ;;  %s219_s15 = int_to_ptr.vmem [resolvable:$true] %s218_s15 }
  0x14   : > { %p1351_p13 = pnand %p1047_p10, %p1325_p5  ;;  %p910_p0 = scmp.ge.s32.totalorder %s1249_s21, 1 }
  0x15   : > { %p235_p1 = scmp.lt.s32.totalorder %s1249_s21, 3  ;;  %s207_s17 = scalar_lea.sflag [#allocation3], %s206_s7 }
  0x16   : > { %s1121_s23 = sshra.s32 %s217_s13, 4  ;;  %p1125_p3 = pneg %p1351_p13  ;;  %s1122_s23 = int_to_ptr.hbm [resolvable:$true] %s1121_s23 }
  0x17   : > { %s1123_s25 = scalar_lea.hbm %s1122_s23, 32  ;;  %s1128_s28 = scalar_lea.hbm %s1568_s2, 64 }
  0x18   : > { %p1124_p2 = scmp.ne.s32.totalorder %s1122_s23, %s1123_s25  ;;  %p1129_p5 = scmp.lt.s32.totalorder %s1122_s23, %s1568_s2 }
  0x19   : > { %p1130_p8 = scmp.lt.s32.totalorder %s1128_s28, %s1123_s25 }
  0x1a   : > { %p1126_p4 = pnand %p1125_p3, %p1124_p2 }
  0x1b   : > { %p1131_p10 = por %p1130_p8, %p1129_p5 }
  0x1c   : > { %p1127_p7 = pneg %p1126_p4 }
  0x1e   : > { %p1132_p9 = pnand %p1131_p10, %p1127_p7 }
  0x20   : > { %1135 = shalt.err (!%p1132_p9)
}
  0x21   : > { %s1251_s7 = smov 64   ;;  %s1252_s11 = smov 4  }
  0x22   : > { %1039 = dma.hbm_to_vmem [thread:$0]  (!%p1351_p13), %s217_s13, 512, %s219_s15, %s207_s17, %s1251_s7, %s1251_s7, %s1252_s11  }
  0x23   : > { %p236_p2 = pnand %p910_p0, %p235_p1 }
  0x24   : > { %s1372_s12 = sand.u32 (!%p236_p2), 1, %s1241_s19  }
  0x25   : > { %239 = sbr.rel (%p236_p2) target bundleno = 293 (0x125), region = 36  ;;  %s911_s14 = sshll.u32 (!%p236_p2), %s1372_s12, 5 }
  0x26   : > { %s242_s23 = scalar_lea.sflag (!%p236_p2), [#allocation3], %s1372_s12  ;;  %s1376_s25 = scalar_lea.vmem (!%p236_p2), [#allocation2], %s911_s14 }
  0x2a   : > { %1224 = dma.done.wait (%p1329_p6), %s242_s23, 512  }
  0x2b   : > { %1226 = vsyncadd (%p1329_p6), %s242_s23, 4294966784  ;;  %s1383_s13 = sshll.u32 %s1307_s22, 3  ;;  %v1253_v0 = vmov 0   ;;  %v985_v1 = vld [vmem:[%s1567_s1 + $0x38] sm:$0xff]  ;;  %v984_v2 = vld [vmem:[%s1567_s1 + $0x30] sm:$0xff]  ;;  %vm723_vm0 = vcmask 1041409  }
  0x2c   : > { %p289_p9 = scmp.lt.s32.totalorder %s1383_s13, 15  ;;  %1086 = vset.pattern.permute.xlu0 %v1253_v0  ;;  %1087 = vset.pattern.permute.xlu1 %v1253_v0  ;;  %v983_v5 = vld [vmem:[%s1567_s1 + $0x28] sm:$0xff]  ;;  %v982_v9 = vld [vmem:[%s1567_s1 + $0x20] sm:$0xff]  ;;  %v981_v11 = vld [vmem:[%s1567_s1 + $0x18] sm:$0xff]  ;;  %vm725_vm1 = vcmask 1042434   ;;  %s745_s9 = scalar_lea.sflag [#allocation7], %s1372_s12 }
  0x2d   : > { %1088 = vset.pattern.permute.xlu2 %v1253_v0  ;;  %398 = vmatpush.bf16.msra.mxu0 %v985_v1  ;;  %v980_v14 = vld [vmem:[%s1567_s1 + $0x10] sm:$0xff]  ;;  %v979_v15 = vld [vmem:[%s1567_s1 + $0x8] sm:$0xff]  ;;  %v978_v16 = vld [vmem:[%s1567_s1] sm:$0xff]  ;;  %s1171_s14 = scalar_lea.hbm %s1571_s5, 128 }
  0x2e   : > { %s1387_s15 = scalar_select %p289_p9, %s1383_s13, 15  ;;  %1006 = vmatpush.bf16.msra.mxu1 %v985_v1  ;;  %1007 = vmatpush.bf16.msra.mxu2 %v985_v1 }
  0x2f   : > { %1008 = vmatpush.bf16.msra.mxu3 %v985_v1 }
  0x30   : > { %s917_s16 = sshll.u32 %s1387_s15, 3  ;;  %s915_s10 = sshll.u32 %s1387_s15, 2 }
  0x31   : > { %s1393_s8 = scalar_lea.vmem %s1569_s3, %s917_s16  ;;  %399 = vmatpush.bf16.msra.mxu0 %v984_v2  ;;  %s292_s23 = scalar_lea.vmem %s1566_s0, %s915_s10 }
  0x32   : > { %v443_v3 = vld [vmem:[%s1393_s8] sm:$0xff]  ;;  %v445_v4 = vld [vmem:[%s1393_s8 + $0x10] sm:$0xff]  ;;  %1009 = vmatpush.bf16.msra.mxu1 %v984_v2  ;;  %1010 = vmatpush.bf16.msra.mxu2 %v984_v2  ;;  %v444_v7 = vld [vmem:[%s1393_s8 + $0x8] sm:$0xff]  ;;  %s913_s15 = sshll.u32 %s1372_s12, 6 }
  0x33   : > { %453 = vperm.xlu0 %1086, %v443_v3   ;;  %463 = vperm.xlu1 %1087, %v445_v4   ;;  %v447_v6 = vld [vmem:[%s1393_s8 + $0x20] sm:$0xff]  ;;  %v446_v8 = vld [vmem:[%s1393_s8 + $0x18] sm:$0xff]  ;;  %v448_v10 = vld [vmem:[%s1393_s8 + $0x28] sm:$0xff]  ;;  %s1477_s16 = scalar_lea.vmem [#allocation6], %s913_s15 }
  0x34   : > { %1011 = vmatpush.bf16.msra.mxu3 %v984_v2  ;;  %473 = vperm.xlu2 %1088, %v447_v6   ;;  %v449_v12 = vld [vmem:[%s1393_s8 + $0x30] sm:$0xff]  ;;  %v450_v13 = vld [vmem:[%s1393_s8 + $0x38] sm:$0xff]  ;;  %v974_v17 = vld [vmem:[%s292_s23] sm:$0xff] }
  0x35   : > { %400 = vmatpush.bf16.msra.mxu0 %v983_v5  ;;  %v975_v18 = vld [vmem:[%s292_s23 + $0x8] sm:$0xff]  ;;  %v976_v19 = vld [vmem:[%s292_s23 + $0x10] sm:$0xff]  ;;  %v977_v20 = vld [vmem:[%s292_s23 + $0x18] sm:$0xff] }
  0x36   : > { %1012 = vmatpush.bf16.msra.mxu1 %v983_v5  ;;  %1013 = vmatpush.bf16.msra.mxu2 %v983_v5 }
  0x38   : > { %1014 = vmatpush.bf16.msra.mxu3 %v983_v5 }
  0x39   : > { %401 = vmatpush.bf16.msra.mxu0 %v982_v9 }
  0x3a   : > { %1015 = vmatpush.bf16.msra.mxu1 %v982_v9  ;;  %1016 = vmatpush.bf16.msra.mxu2 %v982_v9 }
  0x3b   : > { %458 = vperm.xlu0 %1086, %v444_v7   ;;  %468 = vperm.xlu1 %1087, %v446_v8  }
  0x3c   : > { %1017 = vmatpush.bf16.msra.mxu3 %v982_v9  ;;  %478 = vperm.xlu2 %1088, %v448_v10  }
  0x3d   : > { %402 = vmatpush.bf16.msra.mxu0 %v981_v11 }
  0x3e   : > { %1018 = vmatpush.bf16.msra.mxu1 %v981_v11  ;;  %1019 = vmatpush.bf16.msra.mxu2 %v981_v11 }
  0x40   : > { %1020 = vmatpush.bf16.msra.mxu3 %v981_v11 }
  0x41   : > { %403 = vmatpush.bf16.msra.mxu0 %v980_v14 }
  0x42   : > { %1021 = vmatpush.bf16.msra.mxu1 %v980_v14  ;;  %1022 = vmatpush.bf16.msra.mxu2 %v980_v14 }
  0x43   : > { %483 = vperm.xlu0 %1086, %v449_v12   ;;  %488 = vperm.xlu1 %1087, %v450_v13  }
  0x44   : > { %1023 = vmatpush.bf16.msra.mxu3 %v980_v14 }
  0x45   : > { %404 = vmatpush.bf16.msra.mxu0 %v979_v15 }
  0x46   : > { %1024 = vmatpush.bf16.msra.mxu1 %v979_v15  ;;  %1025 = vmatpush.bf16.msra.mxu2 %v979_v15 }
  0x48   : > { %1026 = vmatpush.bf16.msra.mxu3 %v979_v15 }
  0x49   : > { %405 = vmatpush.bf16.msra.mxu0 %v978_v16 }
  0x4a   : > { %1027 = vmatpush.bf16.msra.mxu1 %v978_v16  ;;  %1028 = vmatpush.bf16.msra.mxu2 %v978_v16 }
  0x4c   : > { %1029 = vmatpush.bf16.msra.mxu3 %v978_v16  ;;  %406 = vmatmul.bf16.vlgmr.msra.gmra.mxu0 %v974_v17 }
  0x4d   : > { %411 = vmatmul.bf16.vlgmr.msra.gmra.mxu1 %v975_v18  ;;  %416 = vmatmul.bf16.vlgmr.msra.gmra.mxu2 %v976_v19 }
  0x4f   : > { %421 = vmatmul.bf16.vlgmr.msra.gmra.mxu3 %v977_v20 }
  0x8e   : > { %v474_v49 = vpop.permute.xlu2 %473 }
  0xa5   : > { %v454_v21 = vpop.permute.xlu0 %453  ;;  %v464_v22 = vpop.permute.xlu1 %463 }
  0xad   : > { %v459_v25 = vpop.permute.xlu0 %458  ;;  %v469_v44 = vpop.permute.xlu1 %468 }
  0xb5   : > { %v484_v50 = vpop.permute.xlu0 %483 }
  0xc9   : > { %v407_v23 = vpop.f32.mrf.mxu0 }
  0xca   : > { %v412_v24 = vpop.f32.mrf.mxu1  ;;  %v427_v26 = vmul.f32 0.2, %v407_v23 }
  0xcb   : > { %v429_v27 = vmul.f32 0.2, %v412_v24 }
  0xcc   : > { %v435_v28 = vmax.f32 %v407_v23, %v427_v26  ;;  %v489_v23 = vpop.permute.xlu1 %488  ;;  %v479_v26 = vpop.permute.xlu2 %478 }
  0xcd   : > { %v437_v29 = vmax.f32 %v412_v24, %v429_v27 }
  0xce   : > { %v491_v30 = vadd.f32 %v454_v21, %v435_v28 }
  0xcf   : > { %v493_v31 = vadd.f32 %v464_v22, %v437_v29 }
  0xd0   : > { %v499_v32 = vrot.slane %v491_v30, 4  ;;  %v417_v34 = vpop.f32.mrf.mxu2 }
  0xd1   : > { %v511_v33 = vrot.slane %v493_v31, 4  ;;  %v431_v36 = vmul.f32 0.2, %v417_v34  ;;  %v409_v38 = vpop.f32.mrf.mxu0 }
  0xd2   : > { %v422_v35 = vpop.f32.mrf.mxu3  ;;  %v414_v39 = vpop.f32.mrf.mxu1  ;;  %v500_v40 = vmax.f32 %v491_v30, %v499_v32  ;;  %v428_v42 = vmul.f32 0.2, %v409_v38 }
  0xd3   : > { %v433_v37 = vmul.f32 0.2, %v422_v35  ;;  %v512_v41 = vmax.f32 %v493_v31, %v511_v33  ;;  %v430_v43 = vmul.f32 0.2, %v414_v39  ;;  %v439_v45 = vmax.f32 %v417_v34, %v431_v36 }
  0xd4   : > { %v501_v47 = vrot.slane %v500_v40, 2  ;;  %v436_v51 = vmax.f32 %v409_v38, %v428_v42 }
  0xd5   : > { %v441_v46 = vmax.f32 %v422_v35, %v433_v37  ;;  %v513_v48 = vrot.slane %v512_v41, 2  ;;  %v438_v52 = vmax.f32 %v414_v39, %v430_v43  ;;  %v495_v53 = vadd.f32 %v474_v49, %v439_v45 }
  0xd6   : > { %v502_v55 = vmax.f32 %v500_v40, %v501_v47  ;;  %v492_v57 = vadd.f32 %v459_v25, %v436_v51 }
  0xd7   : > { %v497_v54 = vadd.f32 %v484_v50, %v441_v46  ;;  %v514_v56 = vmax.f32 %v512_v41, %v513_v48  ;;  %v494_v58 = vadd.f32 %v469_v44, %v438_v52  ;;  %v523_v59 = vrot.slane %v495_v53, 4 }
  0xd8   : > { %v503_v61 = vrot.slane %v502_v55, 1  ;;  %v505_v63 = vrot.slane %v492_v57, 4  ;;  %v419_v1 = vpop.f32.mrf.mxu2 }
  0xd9   : > { %v535_v60 = vrot.slane %v497_v54, 4  ;;  %v515_v62 = vrot.slane %v514_v56, 1  ;;  %v517_v0 = vrot.slane %v494_v58, 4  ;;  %v524_v3 = vmax.f32 %v495_v53, %v523_v59 }
  0xda   : > { %v424_v2 = vpop.f32.mrf.mxu3  ;;  %v432_v5 = vmul.f32 0.2, %v419_v1  ;;  %v504_v7 = vmax.f32 %v502_v55, %v503_v61  ;;  %v506_v9 = vmax.f32 %v492_v57, %v505_v63 }
  0xdb   : > { %v536_v4 = vmax.f32 %v497_v54, %v535_v60  ;;  %v434_v6 = vmul.f32 0.2, %v424_v2  ;;  %v516_v8 = vmax.f32 %v514_v56, %v515_v62  ;;  %v518_v10 = vmax.f32 %v494_v58, %v517_v0 }
  0xdc   : > { %v525_v11 = vrot.slane %v524_v3, 2  ;;  %v547_v13 = vsub.f32 %v491_v30, %v504_v7  ;;  %v507_v15 = vrot.slane %v506_v9, 2  ;;  %v440_v19 = vmax.f32 %v419_v1, %v432_v5 }
  0xdd   : > { %v537_v12 = vrot.slane %v536_v4, 2  ;;  %v549_v14 = vsub.f32 %v493_v31, %v516_v8  ;;  %v519_v16 = vrot.slane %v518_v10, 2  ;;  %v442_v20 = vmax.f32 %v424_v2, %v434_v6 }
  0xde   : > { %v526_v17 = vmax.f32 %v524_v3, %v525_v11  ;;  %v555_v21 = vmul.f32 1.442695, %v547_v13  ;;  %v508_v24 = vmax.f32 %v506_v9, %v507_v15  ;;  %v496_v29 = vadd.f32 %v479_v26, %v440_v19 }
  0xdf   : > { %v538_v18 = vmax.f32 %v536_v4, %v537_v12  ;;  %v559_v22 = vmul.f32 1.442695, %v549_v14  ;;  %v520_v25 = vmax.f32 %v518_v10, %v519_v16  ;;  %v1431_v32 = vadd.f32 %v489_v23, %v442_v20 }
  0xe0   : > { %v527_v27 = vrot.slane %v526_v17, 1  ;;  %1089 = vpow2.f32 %v555_v21  ;;  %v509_v30 = vrot.slane %v508_v24, 1  ;;  %v529_v35 = vrot.slane %v496_v29, 4 }
  0xe1   : > { %v539_v28 = vrot.slane %v538_v18, 1  ;;  %v521_v31 = vrot.slane %v520_v25, 1  ;;  %1091 = vpow2.f32 %v559_v22  ;;  %v541_v38 = vrot.slane %v1431_v32, 4 }
  0xe2   : > { %v528_v33 = vmax.f32 %v526_v17, %v527_v27  ;;  %v510_v36 = vmax.f32 %v508_v24, %v509_v30  ;;  %v530_v41 = vmax.f32 %v496_v29, %v529_v35  ;;  %v1461_v27 = vld [vmem:[%s1376_s25] sm:$0xff]  }
  0xe3   : > { %v540_v34 = vmax.f32 %v538_v18, %v539_v28  ;;  %v522_v37 = vmax.f32 %v520_v25, %v521_v31  ;;  %v542_v47 = vmax.f32 %v1431_v32, %v541_v38 }
  0xe4   : > { %v551_v39 = vsub.f32 %v495_v53, %v528_v33  ;;  %v548_v42 = vsub.f32 %v492_v57, %v510_v36  ;;  %v531_v46 = vrot.slane %v530_v41, 2  ;;  %v989_v36 = vunpack.c.l.bf16 %v1461_v27 }
  0xe5   : > { %v553_v40 = vsub.f32 %v497_v54, %v540_v34  ;;  %v550_v43 = vsub.f32 %v494_v58, %v522_v37  ;;  %v543_v53 = vrot.slane %v542_v47, 2 }
  0xe6   : > { %v563_v44 = vmul.f32 1.442695, %v551_v39  ;;  %v1435_v48 = vpop.eup %1089  ;;  %v557_v49 = vmul.f32 1.442695, %v548_v42  ;;  %v532_v55 = vmax.f32 %v530_v41, %v531_v46 }
  0xe7   : > { %v567_v45 = vmul.f32 1.442695, %v553_v40  ;;  %v561_v50 = vmul.f32 1.442695, %v550_v43  ;;  %v1437_v51 = vpop.eup %1091  ;;  %v571_v52 = vrot.slane %v1435_v48, 4  ;;  %v544_v58 = vmax.f32 %v542_v47, %v543_v53 }
  0xe8   : > { %1093 = vpow2.f32 %v563_v44  ;;  %v583_v54 = vrot.slane %v1437_v51, 4  ;;  %v533_v57 = vrot.slane %v532_v55, 1 }
  0xe9   : > { %1095 = vpow2.f32 %v567_v45  ;;  %v572_v56 = vadd.f32 %v1435_v48, %v571_v52  ;;  %v545_v62 = vrot.slane %v544_v58, 1 }
  0xea   : > { %1097 = vpow2.f32 %v557_v49  ;;  %v584_v59 = vadd.f32 %v1437_v51, %v583_v54  ;;  %v534_v61 = vmax.f32 %v532_v55, %v533_v57  ;;  %v1482_v54 = vld [vmem:[%s1376_s25 + $0x10] sm:$0xff]   ;;  %v1486_v57 = vld [vmem:[%s1376_s25 + $0x18] sm:$0xff]  }
  0xeb   : > { %1099 = vpow2.f32 %v561_v50  ;;  %v573_v60 = vrot.slane %v572_v56, 2  ;;  %v546_v3 = vmax.f32 %v544_v58, %v545_v62 }
  0xec   : > { %v585_v63 = vrot.slane %v584_v59, 2  ;;  %v552_v2 = vsub.f32 %v496_v29, %v534_v61  ;;  %v997_v61 = vunpack.c.l.bf16 %v1482_v54 }
  0xed   : > { %v574_v1 = vadd.f32 %v573_v60, %v572_v56  ;;  %v554_v11 = vsub.f32 %v1431_v32, %v546_v3  ;;  %v1465_v32 = vld [vmem:[%s1376_s25 + $0x8] sm:$0xff]   ;;  %v1001_v3 = vunpack.c.l.bf16 %v1486_v57  ;;  %s986_s25 = sshll.u32 %s1307_s22, 6  ;;  %s771_s22 = sshll.u32 %s1477_s16, 4  ;;  %s1510_s22 = int_to_ptr.vmem [resolvable:$true] %s771_s22 }
  0xee   : > { %v1443_v0 = vpop.eup %1093  ;;  %v586_v5 = vadd.f32 %v585_v63, %v584_v59  ;;  %v565_v10 = vmul.f32 1.442695, %v552_v2  ;;  %v993_v41 = vunpack.c.l.bf16 %v1465_v32  ;;  %s770_s29 = scalar_lea.hbm %s1571_s5, %s986_s25 }
  0xef   : > { %v1445_v4 = vpop.eup %1095  ;;  %v595_v6 = vrot.slane %v1443_v0, 4  ;;  %v575_v8 = vrot.slane %v574_v1, 1  ;;  %v569_v22 = vmul.f32 1.442695, %v554_v11  ;;  %s773_s28 = sshll.u32 %s770_s29, 4  ;;  %s1512_s28 = int_to_ptr.hbm [resolvable:$true] %s773_s28 }
  0xf0   : > { %v1448_v7 = vpop.eup %1097  ;;  %v607_v9 = vrot.slane %v1445_v4, 4  ;;  %v587_v13 = vrot.slane %v586_v5, 1  ;;  %1101 = vpow2.f32 %v565_v10  ;;  %s1165_s10 = sshra.s32 %s1512_s28, 4  ;;  %s1166_s10 = int_to_ptr.hbm [resolvable:$true] %s1165_s10 }
  0xf1   : > { %v1452_v12 = vpop.eup %1099  ;;  %v596_v14 = vadd.f32 %v1443_v0, %v595_v6  ;;  %v577_v15 = vrot.slane %v1448_v7, 4  ;;  %v576_v16 = vadd.f32 %v575_v8, %v574_v1  ;;  %v990_v8 = vunpack.c.h.bf16 %v1461_v27  ;;  %s1167_s8 = scalar_lea.hbm %s1166_s10, 64  ;;  %p1172_p1 = scmp.lt.s32.totalorder %s1166_s10, %s1571_s5 }
  0xf2   : > { %v608_v17 = vadd.f32 %v1445_v4, %v607_v9  ;;  %v589_v18 = vrot.slane %v1452_v12, 4  ;;  %v588_v19 = vadd.f32 %v587_v13, %v586_v5  ;;  %v994_v9 = vunpack.c.h.bf16 %v1465_v32  ;;  %p1168_p6 = scmp.ne.s32.totalorder %s1166_s10, %s1167_s8  ;;  %p1173_p3 = scmp.lt.s32.totalorder %s1171_s14, %s1167_s8 }
  0xf3   : > { %v597_v20 = vrot.slane %v596_v14, 2  ;;  %v578_v21 = vadd.f32 %v1448_v7, %v577_v15  ;;  %1103 = vrcp.f32 %v576_v16  ;;  %v998_v32 = vunpack.c.h.bf16 %v1482_v54 }
  0xf4   : > { %v609_v23 = vrot.slane %v608_v17, 2  ;;  %v590_v24 = vadd.f32 %v1452_v12, %v589_v18  ;;  %1105 = vrcp.f32 %v588_v19  ;;  %p1169_p13 = pnand %p1168_p6, %p1336_p11  ;;  %p1174_p4 = por %p1173_p3, %p1172_p1 }
  0xf5   : > { %v598_v25 = vadd.f32 %v597_v20, %v596_v14  ;;  %v579_v26 = vrot.slane %v578_v21, 2  ;;  %1107 = vpow2.f32 %v569_v22 }
  0xf6   : > { %v610_v28 = vadd.f32 %v609_v23, %v608_v17  ;;  %v591_v29 = vrot.slane %v590_v24, 2  ;;  %v1467_v33 = vpop.eup %1101  ;;  %p1170_p0 = pneg %p1169_p13 }
  0xf7   : > { %v599_v30 = vrot.slane %v598_v25, 1  ;;  %v580_v31 = vadd.f32 %v579_v26, %v578_v21  ;;  %v601_v39 = vrot.slane %v1467_v33, 4 }
  0xf8   : > { %v611_v34 = vrot.slane %v610_v28, 1  ;;  %v592_v35 = vadd.f32 %v591_v29, %v590_v24  ;;  %p1175_p7 = pnand %p1174_p4, %p1170_p0 }
  0xf9   : > { %v600_v37 = vadd.f32 %v599_v30, %v598_v25  ;;  %v581_v38 = vrot.slane %v580_v31, 1  ;;  %v1104_v40 = vpop.eup %1103  ;;  %v602_v47 = vadd.f32 %v1467_v33, %v601_v39 }
  0xfa   : > { %v612_v42 = vadd.f32 %v611_v34, %v610_v28  ;;  %v593_v43 = vrot.slane %v592_v35, 1  ;;  %v1106_v44 = vpop.eup %1105  ;;  %v627_v45 = vmul.f32 %v1104_v40, %v1435_v48 }
  0xfb   : > { %1109 = vrcp.f32 %v600_v37  ;;  %v582_v46 = vadd.f32 %v581_v38, %v580_v31  ;;  %v1474_v49 = vpop.eup %1107  ;;  %v629_v50 = vmul.f32 %v1106_v44, %v1437_v51  ;;  %v603_v53 = vrot.slane %v602_v47, 2 }
  0xfc   : > { %1111 = vrcp.f32 %v612_v42  ;;  %v594_v52 = vadd.f32 %v593_v43, %v592_v35  ;;  %635 = vst [vmem:[%s1477_s16] sm:$0xff] %v627_v45  ;;  %v659_v55 = vmul.f32 %v989_v36, %v627_v45  ;;  %v613_v48 = vrot.slane %v1474_v49, 4 }
  0xfd   : > { %1113 = vrcp.f32 %v582_v46  ;;  %637 = vst [vmem:[%s1477_s16 + $0x10] sm:$0xff] %v629_v50  ;;  %v661_v56 = vmul.f32 %v993_v41, %v629_v50  ;;  %v604_v58 = vadd.f32 %v603_v53, %v602_v47  ;;  %v1002_v41 = vunpack.c.h.bf16 %v1486_v57 }
  0xfe   : > { %1115 = vrcp.f32 %v594_v52  ;;  %v667_v51 = vrot.slane %v659_v55, 4  ;;  %v614_v59 = vadd.f32 %v1474_v49, %v613_v48 }
  0xff   : > { %v679_v60 = vrot.slane %v661_v56, 4  ;;  %v605_v1 = vrot.slane %v604_v58, 1 }
 0x100   : > { %v668_v63 = vadd.f32 %v667_v51, %v659_v55  ;;  %v615_v2 = vrot.slane %v614_v59, 2 }
 0x101   : > { %v1110_v62 = vpop.eup %1109  ;;  %v606_v11 = vadd.f32 %v605_v1, %v604_v58  ;;  %v680_v15 = vadd.f32 %v679_v60, %v661_v56 }
 0x102   : > { %v1112_v5 = vpop.eup %1111  ;;  %v631_v6 = vmul.f32 %v1110_v62, %v1443_v0  ;;  %v616_v13 = vadd.f32 %v615_v2, %v614_v59  ;;  %v669_v0 = vrot.slane %v668_v63, 2 }
 0x103   : > { %v1114_v10 = vpop.eup %1113  ;;  %v633_v14 = vmul.f32 %v1112_v5, %v1445_v4  ;;  %1117 = vrcp.f32 %v606_v11  ;;  %v681_v25 = vrot.slane %v680_v15, 2 }
 0x104   : > { %v1116_v16 = vpop.eup %1115  ;;  %639 = vst [vmem:[%s1477_s16 + $0x20] sm:$0xff] %v631_v6  ;;  %v628_v17 = vmul.f32 %v1114_v10, %v1448_v7  ;;  %v663_v18 = vmul.f32 %v997_v61, %v631_v6  ;;  %v617_v20 = vrot.slane %v616_v13, 1  ;;  %v670_v7 = vadd.f32 %v669_v0, %v668_v63 }
 0x105   : > { %v630_v19 = vmul.f32 %v1116_v16, %v1452_v12  ;;  %641 = vst [vmem:[%s1477_s16 + $0x30] sm:$0xff] %v633_v14  ;;  %v665_v21 = vmul.f32 %v1001_v3, %v633_v14  ;;  %v682_v31 = vadd.f32 %v681_v25, %v680_v15 }
 0x106   : > { %636 = vst [vmem:[%s1477_s16 + $0x8] sm:$0xff] %v628_v17  ;;  %v660_v22 = vmul.f32 %v990_v8, %v628_v17  ;;  %v691_v23 = vrot.slane %v663_v18, 4  ;;  %v618_v24 = vadd.f32 %v617_v20, %v616_v13  ;;  %v671_v38 = vrot.slane %v670_v7, 1 }
 0x107   : > { %638 = vst [vmem:[%s1477_s16 + $0x18] sm:$0xff] %v630_v19  ;;  %v662_v4 = vmul.f32 %v994_v9, %v630_v19  ;;  %v703_v26 = vrot.slane %v665_v21, 4  ;;  %v683_v45 = vrot.slane %v682_v31, 1 }
 0x108   : > { %v673_v27 = vrot.slane %v660_v22, 4  ;;  %1119 = vrcp.f32 %v618_v24  ;;  %v692_v12 = vadd.f32 %v691_v23, %v663_v18  ;;  %v672_v55 = vadd.f32 %v671_v38, %v670_v7 }
 0x109   : > { %v685_v28 = vrot.slane %v662_v4, 4  ;;  %v1118_v30 = vpop.eup %1117  ;;  %v704_v35 = vadd.f32 %v703_v26, %v665_v21  ;;  %v684_v51 = vadd.f32 %v683_v45, %v682_v31 }
 0x10a   : > { %v674_v29 = vadd.f32 %v673_v27, %v660_v22  ;;  %v632_v37 = vmul.f32 %v1118_v30, %v1467_v33  ;;  %v693_v40 = vrot.slane %v692_v12, 2 }
 0x10b   : > { %v686_v34 = vadd.f32 %v685_v28, %v662_v4  ;;  %v705_v47 = vrot.slane %v704_v35, 2 }
 0x10c   : > { %v675_v36 = vrot.slane %v674_v29, 2  ;;  %640 = vst [vmem:[%s1477_s16 + $0x28] sm:$0xff] %v632_v37  ;;  %v664_v42 = vmul.f32 %v998_v32, %v632_v37  ;;  %v694_v53 = vadd.f32 %v693_v40, %v692_v12 }
 0x10d   : > { %v687_v39 = vrot.slane %v686_v34, 2  ;;  %v706_v58 = vadd.f32 %v705_v47, %v704_v35 }
 0x10e   : > { %v676_v43 = vadd.f32 %v675_v36, %v674_v29  ;;  %v1120_v44 = vpop.eup %1119  ;;  %v697_v52 = vrot.slane %v664_v42, 4 }
 0x10f   : > { %v688_v46 = vadd.f32 %v687_v39, %v686_v34  ;;  %v634_v33 = vmul.f32 %v1120_v44, %v1474_v49 }
 0x110   : > { %v677_v50 = vrot.slane %v676_v43, 1  ;;  %v698_v57 = vadd.f32 %v697_v52, %v664_v42 }
 0x111   : > { %642 = vst [vmem:[%s1477_s16 + $0x38] sm:$0xff] %v634_v33  ;;  %v666_v48 = vmul.f32 %v1002_v41, %v634_v33  ;;  %v689_v56 = vrot.slane %v688_v46, 1 }
 0x112   : > { %v678_v54 = vadd.f32 %v677_v50, %v676_v43 }
 0x113   : > { %1178 = shalt.err (!%p1175_p7)
}
 0x114   : > { %s1254_s16 = smov 128   ;;  %s1255_s25 = smov 8   ;;  %v699_v49 = vrot.slane %v698_v57, 2  ;;  %v709_v59 = vrot.slane %v666_v48, 4  ;;  %v724_v60 = vsel %vm723_vm0, %v678_v54, %v672_v55  ;;  %v695_v61 = vrot.slane %v694_v53, 1 }
 0x115   : > { %1033 = dma.vmem_to_hbm [thread:$0]  (%p1336_p11), %s1510_s22, 1024, %s1512_s28, %s745_s9, %s1254_s16, %s1254_s16, %s1255_s25   ;;  %v726_v62 = vsel %vm725_vm1, %v684_v51, %v724_v60  ;;  %vm727_vm2 = vcmask 1043459   ;;  %v690_v63 = vadd.f32 %v689_v56, %v688_v46  ;;  %v707_v3 = vrot.slane %v706_v58, 1 }
 0x116   : > { %s912_s17 = sshll.u32 %s1372_s12, 3  ;;  %v700_v1 = vadd.f32 %v699_v49, %v698_v57  ;;  %v710_v2 = vadd.f32 %v709_v59, %v666_v48  ;;  %vm729_vm3 = vcmask 1044484   ;;  %v696_v9 = vadd.f32 %v695_v61, %v694_v53  ;;  %s755_s22 = scalar_lea.hbm %s1570_s4, %s1383_s13 }
 0x117   : > { %v728_v8 = vsel %vm727_vm2, %v690_v63, %v726_v62  ;;  %vm731_vm4 = vcmask 1045509   ;;  %vm733_vm5 = vcmask 1046534   ;;  %v708_v13 = vadd.f32 %v707_v3, %v706_v58  ;;  %s280_s28 = scalar_lea.vmem [#allocation5], %s912_s17  ;;  %s759_s10 = sshll.u32 %s755_s22, 4  ;;  %s760_s10 = int_to_ptr.hbm [resolvable:$true] %s759_s10 }
 0x118   : > { %v701_v5 = vrot.slane %v700_v1, 1  ;;  %v711_v6 = vrot.slane %v710_v2, 2  ;;  %v730_v14 = vsel %vm729_vm3, %v696_v9, %v728_v8  ;;  %s757_s9 = sshll.u32 %s280_s28, 4  ;;  %vm735_vm6 = vcmask 1047559   ;;  %s740_s13 = scalar_lea.sflag [#allocation4], %s1372_s12  ;;  %s758_s9 = int_to_ptr.vmem [resolvable:$true] %s757_s9 }
 0x119   : > { %s1193_s8 = sshra.s32 %s760_s10, 4  ;;  %s1199_s23 = scalar_lea.hbm %s1570_s4, 16  ;;  %s1194_s8 = int_to_ptr.hbm [resolvable:$true] %s1193_s8 }
 0x11a   : > { %v702_v10 = vadd.f32 %v701_v5, %v700_v1  ;;  %v712_v11 = vadd.f32 %v711_v6, %v710_v2  ;;  %s1195_s7 = scalar_lea.hbm %s1194_s8, 8  ;;  %p1200_p2 = scmp.lt.s32.totalorder %s1194_s8, %s1570_s4 }
 0x11b   : > { %p1196_p5 = scmp.ne.s32.totalorder %s1194_s8, %s1195_s7  ;;  %p1201_p9 = scmp.lt.s32.totalorder %s1199_s23, %s1195_s7 }
 0x11c   : > { %v713_v15 = vrot.slane %v712_v11, 1  ;;  %v732_v16 = vsel %vm731_vm4, %v702_v10, %v730_v14 }
 0x11d   : > { %v734_v17 = vsel %vm733_vm5, %v708_v13, %v732_v16  ;;  %p1197_p8 = pnand %p1196_p5, %p1336_p11  ;;  %p1202_p6 = por %p1201_p9, %p1200_p2 }
 0x11e   : > { %v714_v18 = vadd.f32 %v713_v15, %v712_v11 }
 0x11f   : > { %p1198_p10 = pneg %p1197_p8 }
 0x120   : > { %v736_v0 = vsel %vm735_vm6, %v714_v18, %v734_v17 }
 0x121   : > { %738 = vst [vmem:[%s280_s28] sm:$0xff] %v736_v0  ;;  %p1203_p13 = pnand %p1202_p6, %p1198_p10 }
 0x123   : > { %1206 = shalt.err (!%p1203_p13)
}
 0x124   : > { %1032 = dma.vmem_to_hbm [thread:$0]  (%p1336_p11), %s758_s9, 128, %s760_s10, %s740_s13  }
 0x125 PF: > { %s788_s12 = sand.u32 1, %s1237_s18   ;;  %p1577_p0 = scmp.ge.s32.totalorder %s1249_s21, 2 }
 0x126   : > { %s789_s25 = scalar_lea.sflag [#allocation4], %s788_s12 }
 0x127   : > { %p1041_p1 = pnand %p1577_p0, %p1340_p12 }
 0x129   : > { %p1042_p3 = pneg %p1041_p1 }
 0x12b   : > { %1228 = dma.done.wait (%p1042_p3), %s789_s25, 128  }
 0x12c   : > { %1230 = vsyncadd (%p1042_p3), %s789_s25, 4294967168  ;;  %s799_s17 = scalar_lea.sflag [#allocation7], %s788_s12 }
 0x12d   : > { %1232 = dma.done.wait (%p1042_p3), %s799_s17, 1024  }
 0x12e   : > { %1234 = vsyncadd (%p1042_p3), %s799_s17, 4294966272  ;;  %p22_p11 = scmp.ge.s32.totalorder %s1311_s24, 4   ;;  %s1578_s18 = smov %s1241_s19 }
 0x12f   : > { %s1579_s19 = smov %s1245_s20  ;;  %s1580_s20 = smov %s1323_s27 }
 0x130   : > { %s1581_s21 = smov %s1311_s24  ;;  %24 = sbr.rel (!%p22_p11) target bundleno = 7 (0x7), region = 104 }
 0x135   :  { %805 = vsyncpa [#allocation3], 1 }
 0x136   :  { %807 = vsyncpa [#allocation3 + $0x1], 1 }
 0x137   :  { %808 = vsyncpa [#allocation4], 1 }
 0x138   :  { %810 = vsyncpa [#allocation4 + $0x1], 1 }
 0x139   :  { %811 = vsyncpa [#allocation7], 1 }
 0x13a   :  { %813 = vsyncpa [#allocation7 + $0x1], 1 }

</bundles_post_ra>
